<compile_context>
chip_gen: v7x
topology: tpu7x:2x2x1
jax: 0.10.0
libtpu: 0.0.40
codegen_flags: <defaults>
</compile_context>

<pallas_src>
import functools

import jax
import jax.numpy as jnp
from jax import lax
from jax.experimental import pallas as pl
from jax.experimental.pallas import tpu as pltpu

_LANES = 128
_ACC_SUBLANES = 8                 # f32 accumulator vreg rows
_TARGET_TILE_BYTES = 2 << 20      # ~2 MiB per input per buffer (HBM-roofline sweet spot)
_MAX_TILE_BYTES = 4 << 20         # cap: 2 inputs x 2 buffers x 4 MiB = 16 MiB total


def _round_down(x, m):
    return (x // m) * m


def _sublane_multiple(dtype) -> int:
    """Minimum row multiple for a (rows, 128) block of this dtype."""
    itemsize = jnp.dtype(dtype).itemsize
    return max(8, 32 // max(1, itemsize))   # f32/int32 -> 8, bf16 -> 16, int8/fp8 -> 32


@functools.lru_cache(maxsize=None)
def _detect_tensorcores() -> int:
    """TensorCores per chip: 2 on v7x, 1 on v5e/v6e; defensive fallback to 1."""
    try:
        info = pltpu.get_tpu_info()
        for name in ("num_cores", "num_tensorcores", "tensorcore_count",
                     "cores_per_chip", "num_tensor_cores"):
            v = getattr(info, name, None)
            if isinstance(v, int) and v >= 1:
                return v
    except Exception:
        pass
    try:
        v = getattr(jax.devices()[0], "num_cores", None)
        if isinstance(v, int) and v >= 1:
            return v
    except Exception:
        pass
    return 1


def _make_sse_kernel(valid_rows: int, sub_rows: int):
    """Per-tile sum of squared errors into a resident (8,128) f32 output block.

    The output block index depends only on the outer ('parallel') grid axis, so
    it stays in VMEM across the inner ('arbitrary') reduction axis. The steady
    state is vld + vsub + vmul + vadd over 64-row sub-chunks; masking work only
    happens for the (at most one per shard) tile that crosses `valid_rows`.
    """

    def kernel(pred_ref, ref_ref, out_ref):
        @pl.when(pl.program_id(1) == 0)
        def _():
            out_ref[...] = jnp.zeros_like(out_ref)

        tile_rows = pred_ref.shape[0]
        # Logical block index (unclamped) -> global row offset of this tile.
        blk = pl.program_id(0) * pl.num_programs(1) + pl.program_id(1)
        row0 = blk * tile_rows
        n_sub = tile_rows // sub_rows

        def make_body(masked):
            def body(c, acc):
                r0 = pl.multiple_of(c * sub_rows, sub_rows)
                pv = pred_ref[pl.ds(r0, sub_rows), :].astype(jnp.float32)
                rv = ref_ref[pl.ds(r0, sub_rows), :].astype(jnp.float32)
                d = pv - rv
                sq = d * d
                if masked:
                    rid = row0 + r0 + lax.broadcasted_iota(
                        jnp.int32, (sub_rows, _LANES), 0)
                    sq = jnp.where(rid < valid_rows, sq, 0.0)
                return acc + jnp.sum(
                    sq.reshape(sub_rows // _ACC_SUBLANES, _ACC_SUBLANES, _LANES),
                    axis=0)
            return body

        zero = jnp.zeros((_ACC_SUBLANES, _LANES), jnp.float32)
        is_full = row0 + tile_rows <= valid_rows

        @pl.when(is_full)                       # steady state: no mask work
        def _():
            out_ref[...] += lax.fori_loop(0, n_sub, make_body(False), zero)

        @pl.when(jnp.logical_not(is_full))      # edge / padded tile: masked
        def _():
            out_ref[...] += lax.fori_loop(0, n_sub, make_body(True), zero)

    return kernel


def loss_base_forward(pred, ref, *, weight=1.0, tile_rows=None, num_parallel=None):
    """weight * MSELoss(reduction='mean')(pred, ref); hot reduction in Pallas."""
    assert pred.shape == ref.shape, "pred/ref must have identical shapes"
    numel = int(pred.size)
    assert numel > 0, "empty input"

    p1 = jnp.ravel(pred)          # free layout-preserving reshape; native dtype
    r1 = jnp.ravel(ref)

    sublane = max(_sublane_multiple(pred.dtype), _sublane_multiple(ref.dtype))
    itemsize = max(jnp.dtype(pred.dtype).itemsize, jnp.dtype(ref.dtype).itemsize)

    def _jnp_sse(a, b):
        d = a.astype(jnp.float32) - b.astype(jnp.float32)
        return jnp.sum(d * d)

    # 128-aligned bulk goes through the kernel; the <128-element tail is reduced
    # in plain JAX (reads only a few hundred bytes). No concatenate padding.
    bulk = (numel // _LANES) * _LANES
    rows = bulk // _LANES
    tail_sse = _jnp_sse(p1[bulk:], r1[bulk:]) if bulk != numel else None

    if rows < sublane:
        # Less than one (sublane,128) tile of data: not worth a kernel launch.
        sse = _jnp_sse(p1[:bulk], r1[:bulk]) if rows > 0 else jnp.float32(0.0)
        if tail_sse is not None:
            sse = sse + tail_sse
        return weight * sse / numel

    if bulk == numel:
        p2 = p1.reshape(rows, _LANES)
        r2 = r1.reshape(rows, _LANES)
    else:
        # TODO(synk): for non-128-aligned shapes this prefix slice may still
        # materialize one copy of the bulk; fully copy-free handling needs a
        # manual DMA from a pl.ANY ref.
        p2 = p1[:bulk].reshape(rows, _LANES)
        r2 = r1[:bulk].reshape(rows, _LANES)

    # --- tile sizing: ~2 MiB per input per buffer, dtype-aware row multiples ---
    if tile_rows is None:
        tile_rows = _TARGET_TILE_BYTES // (_LANES * itemsize)
    tile_rows = max(sublane, _round_down(int(tile_rows), sublane))
    max_tile_rows = max(sublane,
                        _round_down(_MAX_TILE_BYTES // (_LANES * itemsize), sublane))
    tile_rows = min(tile_rows, max_tile_rows)
    tile_rows_eff = min(tile_rows, _round_down(rows, sublane))
    chunks = pl.cdiv(rows, tile_rows_eff)

    # --- parallel shards: 2 only on chips with 2 TensorCores (v7x) ---
    n_par = _detect_tensorcores() if num_parallel is None else int(num_parallel)
    n_par = max(1, min(2, n_par))
    if chunks < n_par:
        n_par = 1
    inner = pl.cdiv(chunks, n_par)
    last_blk = chunks - 1

    # Sub-chunk rows for the in-kernel accumulation loop (small live vreg set).
    sub_rows = 64
    while tile_rows_eff % sub_rows != 0:
        sub_rows //= 2            # stops at >= sublane since sublane | tile_rows_eff

    def in_map(p, i):
        # Clamp padded trailing blocks (chunks % n_par != 0) so the DMA never
        # goes out of bounds; the kernel masks them via the logical block index.
        return (jnp.minimum(p * inner + i, last_blk), 0)

    def out_map(p, i):
        return (p, 0)

    tile_bytes = tile_rows_eff * _LANES * itemsize
    vmem_limit = int(min(max(4 * tile_bytes + (4 << 20), 16 << 20), 48 << 20))

    partials = pl.pallas_call(
        _make_sse_kernel(rows, sub_rows),
        out_shape=jax.ShapeDtypeStruct((n_par * _ACC_SUBLANES, _LANES), jnp.float32),
        grid_spec=pltpu.PrefetchScalarGridSpec(
            num_scalar_prefetch=0,
            grid=(n_par, inner),
            in_specs=[
                pl.BlockSpec((tile_rows_eff, _LANES), in_map),
                pl.BlockSpec((tile_rows_eff, _LANES), in_map),
            ],
            out_specs=pl.BlockSpec((_ACC_SUBLANES, _LANES), out_map),
        ),
        compiler_params=pltpu.CompilerParams(
            dimension_semantics=("parallel", "arbitrary"),
            vmem_limit_bytes=vmem_limit,
        ),
    )(p2, r2)

    # Final cross-lane reduce + weighting on a tiny (n_par*8, 128) slab; keeping
    # `weight` out of the kernel supports traced / learned weights w/o retrace.
    # TODO(synk): for latency-critical tiny inputs this reduce could be fused
    # into the kernel's last step as an SMEM scalar output.
    sse = jnp.sum(partials)
    if tail_sse is not None:
        sse = sse + tail_sse
    return weight * sse / numel


class LossBasePallas:
    """Mirror of physicsml LossBase: loss = weight * loss_func(pred[col], ref[col])."""

    def __init__(self, loss_config: dict, column_name: str) -> None:
        self.weight = loss_config.get("weight", 1.0)
        self.column_name = column_name
        if loss_config["name"] != "MSELoss":
            # TODO(synk): other _STOCK_LOSSES entries (L1Loss, HuberLoss, ...) not implemented.
            raise NotImplementedError(loss_config["name"])
        self.config = loss_config.get("config", {})

    def __call__(self, pred: dict, ref: dict):
        return loss_base_forward(
            pred[self.column_name], ref[self.column_name], weight=self.weight)


if __name__ == "__main__":
    key = jax.random.PRNGKey(0)
    k = jax.random.split(key, 8)

    module = LossBasePallas({"name": "MSELoss", "weight": 0.5}, column_name="energy")

    # 1) Shipped tiny shape: single-block path (grid=(1,1), no masking).
    shape = (2, 4, 16, 16)
    p = jax.random.normal(k[0], shape, dtype=jnp.float32)
    r = jax.random.normal(k[1], shape, dtype=jnp.float32)
    loss = jax.block_until_ready(module({"energy": p}, {"energy": r}))
    ref_loss = 0.5 * jnp.mean((p - r) ** 2)
    assert jnp.allclose(loss, ref_loss, rtol=1e-5, atol=1e-6), (loss, ref_loss)

    # 2) Odd, non-128-aligned shape with a small tile override: exercises the
    #    multi-chunk grid, in-kernel row masking and the plain-JAX tail path.
    shape2 = (3, 5, 37, 29)
    p2 = jax.random.normal(k[2], shape2, dtype=jnp.float32)
    r2 = jax.random.normal(k[3], shape2, dtype=jnp.float32)
    loss2 = jax.block_until_ready(loss_base_forward(p2, r2, weight=1.3, tile_rows=64))
    ref2 = 1.3 * jnp.mean((p2 - r2) ** 2)
    assert jnp.allclose(loss2, ref2, rtol=1e-5, atol=1e-6), (loss2, ref2)

    # 3) 128-aligned rows, multi-chunk grid, partial last block, forced 2-shard
    #    ('parallel' axis) path with the clamped index_map.
    shape3 = (4, 4, 40, 129)
    p3 = jax.random.normal(k[4], shape3, dtype=jnp.float32)
    r3 = jax.random.normal(k[5], shape3, dtype=jnp.float32)
    loss3 = jax.block_until_ready(
        loss_base_forward(p3, r3, weight=0.7, tile_rows=128, num_parallel=2))
    ref3 = 0.7 * jnp.mean((p3 - r3) ** 2)
    assert jnp.allclose(loss3, ref3, rtol=1e-5, atol=1e-6), (loss3, ref3)

    # 4) bf16 inputs: dtype-aware (16,128) sublane tiling + masked edge tile.
    shape4 = (2, 3, 50, 64)
    p4 = jax.random.normal(k[6], shape4, dtype=jnp.float32).astype(jnp.bfloat16)
    r4 = jax.random.normal(k[7], shape4, dtype=jnp.float32).astype(jnp.bfloat16)
    loss4 = jax.block_until_ready(loss_base_forward(p4, r4, weight=1.0))
    ref4 = jnp.mean((p4.astype(jnp.float32) - r4.astype(jnp.float32)) ** 2)
    assert jnp.allclose(loss4, ref4, rtol=1e-4, atol=1e-6), (loss4, ref4)

    print("KERNEL_OK")
</pallas_src>

<mosaic_0001>
module attributes {stable_mosaic.version = 11 : i64} {
  func.func @kernel(%arg0: i32, %arg1: i32, %arg2: memref<16x128xf32, #tpu.memory_space<vmem>>, %arg3: memref<16x128xf32, #tpu.memory_space<vmem>>, %arg4: memref<8x128xf32, #tpu.memory_space<vmem>>) attributes {dimension_semantics = [#tpu.dimension_semantics<parallel>, #tpu.dimension_semantics<arbitrary>], iteration_bounds = array<i64: 1, 1>, scalar_prefetch = 0 : i64, scratch_operands = 0 : i64, tpu.core_type = #tpu.core_type<tc>, window_params = [{transform_indices = @transform_0, window_bounds = array<i64: 16, 128>}, {transform_indices = @transform_1, window_bounds = array<i64: 16, 128>}, {transform_indices = @transform_2, window_bounds = array<i64: 8, 128>}]} {
    %c0_i32 = arith.constant 0 : i32
    %0 = arith.cmpi eq, %arg1, %c0_i32 : i32
    %1 = arith.extui %0 : i1 to i32
    %c0_i32_0 = arith.constant 0 : i32
    %2 = arith.cmpi ne, %1, %c0_i32_0 : i32
    scf.if %2 {
      %cst_5 = arith.constant 0.000000e+00 : f32
      %14 = vector.broadcast %cst_5 : f32 to vector<8x128xf32>
      %c0 = arith.constant 0 : index
      %c0_6 = arith.constant 0 : index
      %15 = vector.load %arg4[%c0, %c0_6] : memref<8x128xf32, #tpu.memory_space<vmem>>, vector<8x128xf32>
      tpu.vector_store %arg4[%c0, %c0_6], %14 {strides = array<i32>} : memref<8x128xf32, #tpu.memory_space<vmem>>, vector<8x128xf32>,
    } else {
    }
    %c1_i32 = arith.constant 1 : i32
    %3 = arith.muli %arg0, %c1_i32 : i32
    %4 = arith.addi %3, %arg1 : i32
    %c16_i32 = arith.constant 16 : i32
    %5 = arith.muli %4, %c16_i32 : i32
    %cst = arith.constant 0.000000e+00 : f32
    %6 = vector.broadcast %cst : f32 to vector<8x128xf32>
    %c16_i32_1 = arith.constant 16 : i32
    %7 = arith.addi %5, %c16_i32_1 : i32
    %c16_i32_2 = arith.constant 16 : i32
    %8 = arith.cmpi sle, %7, %c16_i32_2 : i32
    %9 = arith.extui %8 : i1 to i32
    %c0_i32_3 = arith.constant 0 : i32
    %10 = arith.cmpi ne, %9, %c0_i32_3 : i32
    scf.if %10 {
      %c0 = arith.constant 0 : index
      %c0_5 = arith.constant 0 : index
      %14 = vector.load %arg4[%c0, %c0_5] : memref<8x128xf32, #tpu.memory_space<vmem>>, vector<8x128xf32>
      %c0_i32_6 = arith.constant 0 : i32
      %c16_i32_7 = arith.constant 16 : i32
      %15 = arith.muli %c0_i32_6, %c16_i32_7 : i32
      %16 = tpu.assume_multiple %15, 16 : i32
      %17 = arith.index_cast %16 : i32 to index
      %c0_8 = arith.constant 0 : index
      %18 = vector.load %arg2[%17, %c0_8] : memref<16x128xf32, #tpu.memory_space<vmem>>, vector<16x128xf32>
      %19 = arith.index_cast %16 : i32 to index
      %c0_9 = arith.constant 0 : index
      %20 = vector.load %arg3[%19, %c0_9] : memref<16x128xf32, #tpu.memory_space<vmem>>, vector<16x128xf32>
      %21 = arith.subf %18, %20 : vector<16x128xf32>
      %22 = arith.mulf %21, %21 : vector<16x128xf32>
      %23 = vector.shape_cast %22 : vector<16x128xf32> to vector<2x8x128xf32>
      %cst_10 = arith.constant dense<0.000000e+00> : vector<8x128xf32>
      %24 = vector.multi_reduction <add>, %23, %cst_10 [0] : vector<2x8x128xf32> to vector<8x128xf32>
      %25 = arith.addf %6, %24 : vector<8x128xf32>
      %c1_i32_11 = arith.constant 1 : i32
      %26 = arith.addf %14, %25 : vector<8x128xf32>
      %c0_12 = arith.constant 0 : index
      %c0_13 = arith.constant 0 : index
      %27 = vector.load %arg4[%c0_12, %c0_13] : memref<8x128xf32, #tpu.memory_space<vmem>>, vector<8x128xf32>
      tpu.vector_store %arg4[%c0_12, %c0_13], %26 {strides = array<i32>} : memref<8x128xf32, #tpu.memory_space<vmem>>, vector<8x128xf32>,
    } else {
    }
    %true = arith.constant true
    %11 = arith.xori %8, %true : i1
    %12 = arith.extui %11 : i1 to i32
    %c0_i32_4 = arith.constant 0 : i32
    %13 = arith.cmpi ne, %12, %c0_i32_4 : i32
    scf.if %13 {
      %c0 = arith.constant 0 : index
      %c0_5 = arith.constant 0 : index
      %14 = vector.load %arg4[%c0, %c0_5] : memref<8x128xf32, #tpu.memory_space<vmem>>, vector<8x128xf32>
      %c0_i32_6 = arith.constant 0 : i32
      %c16_i32_7 = arith.constant 16 : i32
      %15 = arith.muli %c0_i32_6, %c16_i32_7 : i32
      %16 = tpu.assume_multiple %15, 16 : i32
      %17 = arith.index_cast %16 : i32 to index
      %c0_8 = arith.constant 0 : index
      %18 = vector.load %arg2[%17, %c0_8] : memref<16x128xf32, #tpu.memory_space<vmem>>, vector<16x128xf32>
      %19 = arith.index_cast %16 : i32 to index
      %c0_9 = arith.constant 0 : index
      %20 = vector.load %arg3[%19, %c0_9] : memref<16x128xf32, #tpu.memory_space<vmem>>, vector<16x128xf32>
      %21 = arith.subf %18, %20 : vector<16x128xf32>
      %22 = arith.mulf %21, %21 : vector<16x128xf32>
      %23 = arith.addi %5, %16 : i32
      %24 = tpu.iota {dimensions = array<i32: 0>} : vector<16x128xi32>
      %25 = vector.broadcast %23 : i32 to vector<16x128xi32>
      %26 = arith.addi %25, %24 : vector<16x128xi32>
      %c16_i32_10 = arith.constant 16 : i32
      %27 = vector.broadcast %c16_i32_10 : i32 to vector<16x128xi32>
      %28 = arith.cmpi slt, %26, %27 : vector<16x128xi32>
      %cst_11 = arith.constant 0.000000e+00 : f32
      %29 = vector.broadcast %cst_11 : f32 to vector<16x128xf32>
      %30 = arith.select %28, %22, %29 : vector<16x128xi1>, vector<16x128xf32>
      %31 = vector.shape_cast %30 : vector<16x128xf32> to vector<2x8x128xf32>
      %cst_12 = arith.constant dense<0.000000e+00> : vector<8x128xf32>
      %32 = vector.multi_reduction <add>, %31, %cst_12 [0] : vector<2x8x128xf32> to vector<8x128xf32>
      %33 = arith.addf %6, %32 : vector<8x128xf32>
      %c1_i32_13 = arith.constant 1 : i32
      %34 = arith.addf %14, %33 : vector<8x128xf32>
      %c0_14 = arith.constant 0 : index
      %c0_15 = arith.constant 0 : index
      %35 = vector.load %arg4[%c0_14, %c0_15] : memref<8x128xf32, #tpu.memory_space<vmem>>, vector<8x128xf32>
      tpu.vector_store %arg4[%c0_14, %c0_15], %34 {strides = array<i32>} : memref<8x128xf32, #tpu.memory_space<vmem>>, vector<8x128xf32>,
    } else {
    }
    return
  }
  func.func @transform_0(%arg0: i32, %arg1: i32) -> (i32, i32) {
    %c1_i32 = arith.constant 1 : i32
    %0 = arith.muli %arg0, %c1_i32 : i32
    %1 = arith.addi %0, %arg1 : i32
    %c0_i32 = arith.constant 0 : i32
    %2 = arith.minsi %1, %c0_i32 : i32
    %c0_i32_0 = arith.constant 0 : i32
    %c0_i32_1 = arith.constant 0 : i32
    return %2, %c0_i32_0 : i32, i32
  }
  func.func @transform_1(%arg0: i32, %arg1: i32) -> (i32, i32) {
    %c1_i32 = arith.constant 1 : i32
    %0 = arith.muli %arg0, %c1_i32 : i32
    %1 = arith.addi %0, %arg1 : i32
    %c0_i32 = arith.constant 0 : i32
    %2 = arith.minsi %1, %c0_i32 : i32
    %c0_i32_0 = arith.constant 0 : i32
    %c0_i32_1 = arith.constant 0 : i32
    return %2, %c0_i32_0 : i32, i32
  }
  func.func @transform_2(%arg0: i32, %arg1: i32) -> (i32, i32) {
    %c0_i32 = arith.constant 0 : i32
    %c0_i32_0 = arith.constant 0 : i32
    return %arg0, %c0_i32 : i32, i32
  }
}

</mosaic_0001>

<bundles_post_ra>
// kernel: tpu_custom_call.1
= control target key start
LH: loop header
LB: loop body
LE: loop exit
PB: predicated region body
PF: predicated region fallthrough
CT: control target
= control target key end

     0   :  { %7 = vsyncpa [#allocation3], 0  ;;  %s267_s0 = inlined_call_operand.hbm [shape: f32[16,128], index: 0, kind: input, shape index: {}]   ;;  %s268_s1 = inlined_call_operand.hbm [shape: f32[16,128], index: 1, kind: input, shape index: {}]   ;;  %s269_s2 = inlined_call_operand.hbm [shape: f32[8,128], index: 2, kind: output, shape index: {}]  }
   0x1   :  { %8 = vsyncpa [#allocation6], 0 }
   0x2   :  { %9 = vsyncpa [#allocation4], 0  ;;  %s211_s9 = smov [#allocation2]   ;;  %s139_s13 = scalar_lea.hbm %s267_s0, 256 }
   0x3   :  { %s21_s10 = sshll.u32 %s211_s9, 4  ;;  %p140_p0 = scmp.ne.s32.totalorder %s267_s0, %s139_s13  ;;  %s22_s10 = int_to_ptr.vmem [resolvable:$true] %s21_s10 }
   0x4   :  { %p143_p1 = scmp.lt.u32.totalorder %s139_s13, %s267_s0 }
   0x6   :  { %p145_p2 = pnand %p143_p1, %p140_p0 }
   0x8   :  { %148 = shalt.err (!%p145_p2)
}
   0x9   :  { %s149_s18 = scalar_lea.vmem %s22_s10, 256  ;;  %p154_p4 = scmp.lt.s32.totalorder %s22_s10, %s22_s10 }
   0xa   :  { %p150_p3 = scmp.ne.s32.totalorder %s22_s10, %s149_s18  ;;  %p155_p5 = scmp.lt.s32.totalorder %s149_s18, %s149_s18 }
   0xc   :  { %p156_p6 = por %p155_p5, %p154_p4 }
   0xe   :  { %p157_p7 = pnand %p156_p6, %p150_p3 }
  0x10   :  { %160 = shalt.err (!%p157_p7)
}
  0x11   :  { %s212_s19 = smov 128   ;;  %s213_s20 = smov 8  }
  0x12   :  { %27 = dma.hbm_to_vmem [thread:$0]  %s267_s0, 256, %s22_s10, [#allocation3], %s212_s19, %s212_s19, %s213_s20  }
  0x13   :  { %s214_s23 = smov [#allocation5]   ;;  %s161_s27 = scalar_lea.hbm %s268_s1, 256 }
  0x14   :  { %s39_s24 = sshll.u32 %s214_s23, 4  ;;  %p162_p8 = scmp.ne.s32.totalorder %s268_s1, %s161_s27  ;;  %s40_s24 = int_to_ptr.vmem [resolvable:$true] %s39_s24 }
  0x15   :  { %p165_p9 = scmp.lt.u32.totalorder %s161_s27, %s268_s1 }
  0x17   :  { %p167_p10 = pnand %p165_p9, %p162_p8 }
  0x19   :  { %170 = shalt.err (!%p167_p10)
}
  0x1a   :  { %s171_s4 = scalar_lea.vmem %s40_s24, 256  ;;  %p176_p12 = scmp.lt.s32.totalorder %s40_s24, %s40_s24 }
  0x1b   :  { %p172_p11 = scmp.ne.s32.totalorder %s40_s24, %s171_s4  ;;  %p177_p13 = scmp.lt.s32.totalorder %s171_s4, %s171_s4 }
  0x1d   :  { %p178_p0 = por %p177_p13, %p176_p12 }
  0x1f   :  { %p179_p1 = pnand %p178_p0, %p172_p11 }
  0x21   :  { %182 = shalt.err (!%p179_p1)
}
  0x22   :  { %45 = dma.hbm_to_vmem [thread:$0]  %s268_s1, 256, %s40_s24, [#allocation6], %s212_s19, %s212_s19, %s213_s20  }
  0x23   :  { %205 = dma.done.wait [#allocation3], 256  }
  0x24   :  { %206 = vsyncadd [#allocation3], 4294967040 }
  0x25   :  { %207 = dma.done.wait [#allocation6], 256  }
  0x26   :  { %208 = vsyncadd [#allocation6], 4294967040  ;;  %v73_v0 = vld [vmem:[#allocation2] sm:$0xff]  ;;  %v74_v1 = vld [vmem:[#allocation2 + $0x8] sm:$0xff]  ;;  %s215_s6 = smov [#allocation7]  }
  0x27   :  { %v75_v2 = vld [vmem:[#allocation5] sm:$0xff]  ;;  %v76_v3 = vld [vmem:[#allocation5 + $0x8] sm:$0xff]  ;;  %s119_s7 = sshll.u32 %s215_s6, 4  ;;  %s120_s7 = int_to_ptr.vmem [resolvable:$true] %s119_s7 }
  0x28   :  { %v77_v4 = vsub.f32 %v73_v0, %v75_v2  ;;  %v78_v5 = vsub.f32 %v74_v1, %v76_v3  ;;  %s183_s8 = scalar_lea.vmem %s120_s7, 128  ;;  %p188_p3 = scmp.lt.s32.totalorder %s120_s7, %s120_s7 }
  0x29   :  { %p184_p2 = scmp.ne.s32.totalorder %s120_s7, %s183_s8  ;;  %p189_p4 = scmp.lt.s32.totalorder %s183_s8, %s183_s8 }
  0x2a   :  { %v79_v6 = vmul.f32 %v77_v4, %v77_v4  ;;  %v80_v7 = vmul.f32 %v78_v5, %v78_v5 }
  0x2b   :  { %p190_p5 = por %p189_p4, %p188_p3 }
  0x2c   :  { %v81_v8 = vadd.f32 %v80_v7, %v79_v6 }
  0x2d   :  { %p191_p6 = pnand %p190_p5, %p184_p2 }
  0x2e   :  { %84 = vst [vmem:[#allocation7] sm:$0xff] %v81_v8 }
  0x2f   :  { %194 = shalt.err (!%p191_p6)
}
  0x30   :  { %s195_s10 = scalar_lea.hbm %s269_s2, 128 }
  0x31   :  { %p196_p7 = scmp.ne.s32.totalorder %s269_s2, %s195_s10  ;;  %p199_p8 = scmp.lt.u32.totalorder %s195_s10, %s269_s2 }
  0x33   :  { %p201_p9 = pnand %p199_p8, %p196_p7 }
  0x35   :  { %204 = shalt.err (!%p201_p9)
}
  0x36   :  { %122 = dma.vmem_to_hbm [thread:$0]  %s120_s7, 128, %s269_s2, [#allocation4]  }
  0x37   :  { %209 = dma.done.wait [#allocation4], 128  }
  0x38   :  { %210 = vsyncadd [#allocation4], 4294967168 }
  0x39   :  { %126 = vsyncpa [#allocation3], 1 }
  0x3a   :  { %127 = vsyncpa [#allocation6], 1 }
  0x3b   :  { %128 = vsyncpa [#allocation4], 1 }

</bundles_post_ra>
